<compile_context>
chip_gen: v6e
topology: v6e:2x2x1
jax: 0.10.0
libtpu: 0.0.40
codegen_flags: <defaults>
</compile_context>

<pallas_src>
import functools

import numpy as np
import jax
import jax.numpy as jnp
from jax.experimental import pallas as pl
from jax.experimental.pallas import tpu as pltpu

_GELU_C = float(np.sqrt(2.0 / np.pi))


def feedforward_kernel(x_ref, w1_ref, b1_ref, w2_ref, b2_ref, o_ref, *, gelu_dtype):
    # x_ref: (tm, dim) f32   w1: (dim, mlp) bf16   b1: (1, mlp) f32
    # w2:   (mlp, dim) bf16  b2: (1, dim) f32      o: (tm, dim) f32
    #
    # First linear on the MXU: bf16 operands (x cast in-kernel), f32 accumulation,
    # f32 bias add.
    h = jnp.dot(x_ref[...].astype(jnp.bfloat16), w1_ref[...],
                preferred_element_type=jnp.float32) + b1_ref[...]

    # tanh-approx GELU, exactly the reference module's form:
    #   0.5 * h * (1 + tanh(c * (h + 0.044715 * h^3)))
    # computed in bf16 on v6e/v7x (halves vreg pressure), f32 on v5e/older.
    h = h.astype(gelu_dtype)
    g = 0.5 * h * (1.0 + jnp.tanh(_GELU_C * h * (1.0 + 0.044715 * (h * h))))

    # Second linear on the MXU: bf16 operand, f32 accumulation + f32 bias.
    y = jnp.dot(g.astype(jnp.bfloat16), w2_ref[...],
                preferred_element_type=jnp.float32) + b2_ref[...]

    o_ref[...] = y.astype(o_ref.dtype)


def _round_up(n, m):
    return ((n + m - 1) // m) * m


def _choose_tile_m(n_tokens):
    """Row-tile size: big (512-1024) to amortize per-step overhead, but keep
    >=~4 grid steps when possible so v7x's two TensorCores both get work."""
    t = min(1024, _round_up(n_tokens, 8))
    if n_tokens > 32:
        t = min(t, _round_up(pl.cdiv(n_tokens, 4), 8))
    return max(8, t)


def _pick_gelu_dtype():
    """bf16 GELU only where the VPU/EUP have a bf16 path (v6e / v7x)."""
    try:
        kind = jax.devices()[0].device_kind.lower()
    except Exception:
        return jnp.float32
    if ("v6" in kind) or ("v7" in kind):
        return jnp.bfloat16
    return jnp.float32


def _vmem_limit_bytes(tile_m, dim, mlp_dim):
    bf16, f32 = 2, 4
    # double-buffered resident weights/biases + double-buffered x/out tiles
    resident = 2 * (dim * mlp_dim * bf16 + mlp_dim * dim * bf16
                    + mlp_dim * f32 + dim * f32)
    tiles = 2 * (tile_m * dim * f32 + tile_m * dim * f32)   # f32 x-in + f32 out
    inter = 2 * tile_m * mlp_dim * f32                      # GELU intermediate headroom
    need = resident + tiles + inter
    # Floor at the 32 MiB scoped default; never request all of v7x's 64 MiB.
    return int(min(max(2 * need, 32 * 1024 * 1024), 48 * 1024 * 1024))


def feedforward(x, w1, b1, w2, b2, *, tile_m=None, min_tokens_for_pallas=1024,
                out_dtype=jnp.float32):
    """x: (B, S, dim) float32 -> (B, S, dim) out_dtype (default f32)."""
    B, S, dim = x.shape
    mlp_dim = w1.shape[1]
    N = B * S

    if N < min_tokens_for_pallas:
        # Tiny workloads: fixed dispatch / per-step overhead dwarfs the math;
        # let XLA fuse a plain f32 einsum path instead.
        h = jnp.einsum("bsd,dm->bsm", x, w1) + b1
        g = 0.5 * h * (1.0 + jnp.tanh(_GELU_C * (h + 0.044715 * h ** 3)))
        y = jnp.einsum("bsm,md->bsd", g, w2) + b2
        return y.astype(out_dtype)

    if tile_m is None:
        tile_m = _choose_tile_m(N)
    gelu_dtype = _pick_gelu_dtype()

    x2d = x.reshape(N, dim).astype(jnp.float32)      # activations stay f32 in HBM
    w1_bf = w1.astype(jnp.bfloat16)                  # resident weights precast once
    w2_bf = w2.astype(jnp.bfloat16)
    b1_2d = b1.reshape(1, mlp_dim).astype(jnp.float32)
    b2_2d = b2.reshape(1, dim).astype(jnp.float32)

    cost = pl.CostEstimate(
        flops=4 * N * dim * mlp_dim,                 # two matmuls
        transcendentals=N * mlp_dim,                 # tanh per hidden element
        bytes_accessed=(N * dim * 4                  # x in (f32)
                        + dim * mlp_dim * 2 + mlp_dim * dim * 2   # bf16 weights
                        + mlp_dim * 4 + dim * 4                   # biases
                        + N * dim * 4),              # out (f32)
    )

    out2d = pl.pallas_call(
        functools.partial(feedforward_kernel, gelu_dtype=gelu_dtype),
        out_shape=jax.ShapeDtypeStruct((N, dim), jnp.float32),
        grid_spec=pltpu.PrefetchScalarGridSpec(
            num_scalar_prefetch=0,
            grid=(pl.cdiv(N, tile_m),),
            in_specs=[
                pl.BlockSpec((tile_m, dim), lambda i: (i, 0)),    # x tile (f32)
                pl.BlockSpec((dim, mlp_dim), lambda i: (0, 0)),   # W1 (resident, bf16)
                pl.BlockSpec((1, mlp_dim), lambda i: (0, 0)),     # b1 (f32)
                pl.BlockSpec((mlp_dim, dim), lambda i: (0, 0)),   # W2 (resident, bf16)
                pl.BlockSpec((1, dim), lambda i: (0, 0)),         # b2 (f32)
            ],
            out_specs=pl.BlockSpec((tile_m, dim), lambda i: (i, 0)),
        ),
        compiler_params=pltpu.CompilerParams(
            dimension_semantics=("parallel",),
            vmem_limit_bytes=_vmem_limit_bytes(tile_m, dim, mlp_dim),
        ),
        cost_estimate=cost,
    )(x2d, w1_bf, b1_2d, w2_bf, b2_2d)

    return out2d.reshape(B, S, dim).astype(out_dtype)


def reference_feedforward(x, w1, b1, w2, b2):
    """Pure-JAX reference with the same bf16-operand / f32-accumulate matmuls
    (GELU kept in f32 here; kernel may use bf16 on v6e/v7x — covered by tol)."""
    xb = x.astype(jnp.bfloat16)
    w1b = w1.astype(jnp.bfloat16)
    w2b = w2.astype(jnp.bfloat16)
    h = jnp.einsum("bsd,dm->bsm", xb, w1b,
                   preferred_element_type=jnp.float32) + b1
    g = 0.5 * h * (1.0 + jnp.tanh(_GELU_C * (h + 0.044715 * h ** 3)))
    y = jnp.einsum("bsm,md->bsd", g.astype(jnp.bfloat16), w2b,
                   preferred_element_type=jnp.float32) + b2
    return y


if __name__ == "__main__":
    dim, mlp_dim = 192, 384   # module defaults; lane-dense (>= 128) feature dims

    key = jax.random.PRNGKey(0)
    kx, kw1, kb1, kw2, kb2, kx2 = jax.random.split(key, 6)

    w1 = jax.random.normal(kw1, (dim, mlp_dim), dtype=jnp.float32) / np.sqrt(dim)
    b1 = jax.random.normal(kb1, (mlp_dim,), dtype=jnp.float32) * 0.01
    w2 = jax.random.normal(kw2, (mlp_dim, dim), dtype=jnp.float32) / np.sqrt(mlp_dim)
    b2 = jax.random.normal(kb2, (dim,), dtype=jnp.float32) * 0.01

    # Case 1: small module-sized input (B=2, S=8), force the Pallas path.
    x_small = jax.random.normal(kx, (2, 8, dim), dtype=jnp.float32)
    out_small = feedforward(x_small, w1, b1, w2, b2, min_tokens_for_pallas=0)
    out_small = jax.block_until_ready(out_small)
    ref_small = reference_feedforward(x_small, w1, b1, w2, b2)
    np.testing.assert_allclose(np.asarray(out_small), np.asarray(ref_small),
                               rtol=2e-2, atol=2e-2)

    # Case 2: multi-step grid with a partial last block (N=210, tile chosen
    # adaptively -> 4 grid steps, last one clipped).
    x_mid = jax.random.normal(kx2, (3, 70, dim), dtype=jnp.float32)
    out_mid = feedforward(x_mid, w1, b1, w2, b2, min_tokens_for_pallas=0)
    out_mid = jax.block_until_ready(out_mid)
    ref_mid = reference_feedforward(x_mid, w1, b1, w2, b2)
    np.testing.assert_allclose(np.asarray(out_mid), np.asarray(ref_mid),
                               rtol=2e-2, atol=2e-2)

    print("KERNEL_OK")
</pallas_src>

<mosaic_0001>
module attributes {stable_mosaic.version = 11 : i64} {
  func.func @feedforward_kernel(%arg0: i32, %arg1: memref<16x192xf32, #tpu.memory_space<vmem>>, %arg2: memref<192x384xbf16, #tpu.memory_space<vmem>>, %arg3: memref<1x384xf32, #tpu.memory_space<vmem>>, %arg4: memref<384x192xbf16, #tpu.memory_space<vmem>>, %arg5: memref<1x192xf32, #tpu.memory_space<vmem>>, %arg6: memref<16x192xf32, #tpu.memory_space<vmem>>) attributes {dimension_semantics = [#tpu.dimension_semantics<parallel>], iteration_bounds = array<i64: 1>, scalar_prefetch = 0 : i64, scratch_operands = 0 : i64, tpu.core_type = #tpu.core_type<tc>, window_params = [{transform_indices = @transform_0, window_bounds = array<i64: 16, 192>}, {pipeline_mode = #tpu.pipeline_mode<synchronous>, transform_indices = @transform_1, window_bounds = array<i64: 192, 384>}, {pipeline_mode = #tpu.pipeline_mode<synchronous>, transform_indices = @transform_2, window_bounds = array<i64: 1, 384>}, {pipeline_mode = #tpu.pipeline_mode<synchronous>, transform_indices = @transform_3, window_bounds = array<i64: 384, 192>}, {pipeline_mode = #tpu.pipeline_mode<synchronous>, transform_indices = @transform_4, window_bounds = array<i64: 1, 192>}, {transform_indices = @transform_5, window_bounds = array<i64: 16, 192>}]} {
    %c0 = arith.constant 0 : index
    %c0_0 = arith.constant 0 : index
    %0 = vector.load %arg1[%c0, %c0_0] : memref<16x192xf32, #tpu.memory_space<vmem>>, vector<16x192xf32>
    %1 = arith.truncf %0 : vector<16x192xf32> to vector<16x192xbf16>
    %c0_1 = arith.constant 0 : index
    %c0_2 = arith.constant 0 : index
    %2 = vector.load %arg2[%c0_1, %c0_2] : memref<192x384xbf16, #tpu.memory_space<vmem>>, vector<192x384xbf16>
    %cst = arith.constant dense<0.000000e+00> : vector<16x384xf32>
    %3 = tpu.matmul %1, %2, %cst {dimension_numbers = #tpu.dot_dimension_numbers<[1], [0], [0], [1], [0, 0, 1, 1], [], []>} : vector<16x192xbf16>, vector<192x384xbf16>, vector<16x384xf32> -> vector<16x384xf32>
    %c0_3 = arith.constant 0 : index
    %c0_4 = arith.constant 0 : index
    %4 = vector.load %arg3[%c0_3, %c0_4] : memref<1x384xf32, #tpu.memory_space<vmem>>, vector<1x384xf32>
    %5 = vector.broadcast %4 : vector<1x384xf32> to vector<16x384xf32>
    %6 = arith.addf %3, %5 : vector<16x384xf32>
    %cst_5 = arith.constant 5.000000e-01 : f32
    %7 = vector.broadcast %cst_5 : f32 to vector<16x384xf32>
    %8 = arith.mulf %7, %6 : vector<16x384xf32>
    %cst_6 = arith.constant 0.797884583 : f32
    %9 = vector.broadcast %cst_6 : f32 to vector<16x384xf32>
    %10 = arith.mulf %9, %6 : vector<16x384xf32>
    %11 = arith.mulf %6, %6 : vector<16x384xf32>
    %cst_7 = arith.constant 4.471500e-02 : f32
    %12 = vector.broadcast %cst_7 : f32 to vector<16x384xf32>
    %13 = arith.mulf %12, %11 : vector<16x384xf32>
    %cst_8 = arith.constant 1.000000e+00 : f32
    %14 = vector.broadcast %cst_8 : f32 to vector<16x384xf32>
    %15 = arith.addf %14, %13 : vector<16x384xf32>
    %16 = arith.mulf %10, %15 : vector<16x384xf32>
    %17 = math.tanh %16 : vector<16x384xf32>
    %cst_9 = arith.constant 1.000000e+00 : f32
    %18 = vector.broadcast %cst_9 : f32 to vector<16x384xf32>
    %19 = arith.addf %18, %17 : vector<16x384xf32>
    %20 = arith.mulf %8, %19 : vector<16x384xf32>
    %21 = arith.truncf %20 : vector<16x384xf32> to vector<16x384xbf16>
    %c0_10 = arith.constant 0 : index
    %c0_11 = arith.constant 0 : index
    %22 = vector.load %arg4[%c0_10, %c0_11] : memref<384x192xbf16, #tpu.memory_space<vmem>>, vector<384x192xbf16>
    %cst_12 = arith.constant dense<0.000000e+00> : vector<16x192xf32>
    %23 = tpu.matmul %21, %22, %cst_12 {dimension_numbers = #tpu.dot_dimension_numbers<[1], [0], [0], [1], [0, 0, 1, 1], [], []>} : vector<16x384xbf16>, vector<384x192xbf16>, vector<16x192xf32> -> vector<16x192xf32>
    %c0_13 = arith.constant 0 : index
    %c0_14 = arith.constant 0 : index
    %24 = vector.load %arg5[%c0_13, %c0_14] : memref<1x192xf32, #tpu.memory_space<vmem>>, vector<1x192xf32>
    %25 = vector.broadcast %24 : vector<1x192xf32> to vector<16x192xf32>
    %26 = arith.addf %23, %25 : vector<16x192xf32>
    %c0_15 = arith.constant 0 : index
    %c0_16 = arith.constant 0 : index
    %27 = vector.load %arg6[%c0_15, %c0_16] : memref<16x192xf32, #tpu.memory_space<vmem>>, vector<16x192xf32>
    tpu.vector_store %arg6[%c0_15, %c0_16], %26 {strides = array<i32>} : memref<16x192xf32, #tpu.memory_space<vmem>>, vector<16x192xf32>,
    return
  }
  func.func @transform_0(%arg0: i32) -> (i32, i32) {
    %c0_i32 = arith.constant 0 : i32
    %c0_i32_0 = arith.constant 0 : i32
    return %arg0, %c0_i32 : i32, i32
  }
  func.func @transform_1(%arg0: i32) -> (i32, i32) {
    %c0_i32 = arith.constant 0 : i32
    %c0_i32_0 = arith.constant 0 : i32
    %c0_i32_1 = arith.constant 0 : i32
    return %c0_i32, %c0_i32_0 : i32, i32
  }
  func.func @transform_2(%arg0: i32) -> (i32, i32) {
    %c0_i32 = arith.constant 0 : i32
    %c0_i32_0 = arith.constant 0 : i32
    %c0_i32_1 = arith.constant 0 : i32
    return %c0_i32, %c0_i32_0 : i32, i32
  }
  func.func @transform_3(%arg0: i32) -> (i32, i32) {
    %c0_i32 = arith.constant 0 : i32
    %c0_i32_0 = arith.constant 0 : i32
    %c0_i32_1 = arith.constant 0 : i32
    return %c0_i32, %c0_i32_0 : i32, i32
  }
  func.func @transform_4(%arg0: i32) -> (i32, i32) {
    %c0_i32 = arith.constant 0 : i32
    %c0_i32_0 = arith.constant 0 : i32
    %c0_i32_1 = arith.constant 0 : i32
    return %c0_i32, %c0_i32_0 : i32, i32
  }
  func.func @transform_5(%arg0: i32) -> (i32, i32) {
    %c0_i32 = arith.constant 0 : i32
    %c0_i32_0 = arith.constant 0 : i32
    return %arg0, %c0_i32 : i32, i32
  }
}

</mosaic_0001>

<bundles_post_ra>
// kernel: tpu_custom_call.1
= control target key start
LH: loop header
LB: loop body
LE: loop exit
PB: predicated region body
PF: predicated region fallthrough
CT: control target
= control target key end

     0   :  { %v1080_v1 = vmov 0   ;;  %vm285_vm0 = vcmask 523264   ;;  %s1423_s0 = inlined_call_operand.vmem [shape: f32[16,192], index: 0, kind: input, shape index: {}]   ;;  %s1424_s1 = inlined_call_operand.vmem [shape: bf16[192,384], index: 1, kind: input, shape index: {}]   ;;  %s1425_s2 = inlined_call_operand.vmem [shape: f32[1,384], index: 2, kind: input, shape index: {}]   ;;  %s1426_s3 = inlined_call_operand.vmem [shape: bf16[384,192], index: 3, kind: input, shape index: {}]   ;;  %s1427_s4 = inlined_call_operand.vmem [shape: f32[1,192], index: 4, kind: input, shape index: {}]   ;;  %s1428_s5 = inlined_call_operand.hbm [shape: f32[16,192], index: 5, kind: output, shape index: {}]  }
   0x1   :  { %v926_v0 = vld [vmem:[%s1424_s1 + $0xac] ss:$12 sps:$4 sm:$0xff]   ;;  %332 = vmatprep.subr.bf16.mxu1 %v1080_v1  ;;  %v928_v2 = vld [vmem:[%s1424_s1 + $0xb0] ss:$12 sps:$4 sm:$0xff]   ;;  %v929_v3 = vld [vmem:[%s1424_s1 + $0xa8] ss:$12 sps:$4 sm:$0xff]  }
   0x2   :  { %289 = vmatprep.subr.bf16.mxu0 %v926_v0  ;;  %333 = vmatpush1.bf16.msra.mxu1 %v928_v2  ;;  %v930_v4 = vld [vmem:[%s1424_s1 + $0x94] ss:$12 sps:$4 sm:$0xff]   ;;  %v932_v5 = vld [vmem:[%s1424_s1 + $0x98] ss:$12 sps:$4 sm:$0xff]   ;;  %v933_v6 = vld [vmem:[%s1424_s1 + $0x90] ss:$12 sps:$4 sm:$0xff]  }
   0x3   :  { %290 = vmatpush1.bf16.msra.mxu0 %v929_v3  ;;  %334 = vmatprep.subr.bf16.mxu1 %v1080_v1  ;;  %v934_v7 = vld [vmem:[%s1424_s1 + $0x7c] ss:$12 sps:$4 sm:$0xff]   ;;  %v936_v8 = vld [vmem:[%s1424_s1 + $0x80] ss:$12 sps:$4 sm:$0xff]   ;;  %v937_v9 = vld [vmem:[%s1424_s1 + $0x78] ss:$12 sps:$4 sm:$0xff]  }
   0x4   :  { %291 = vmatprep.subr.bf16.mxu0 %v930_v4  ;;  %v938_v10 = vld [vmem:[%s1424_s1 + $0x64] ss:$12 sps:$4 sm:$0xff]   ;;  %v940_v11 = vld [vmem:[%s1424_s1 + $0x68] ss:$12 sps:$4 sm:$0xff]   ;;  %v941_v12 = vld [vmem:[%s1424_s1 + $0x60] ss:$12 sps:$4 sm:$0xff]  }
   0x5   :  { %v942_v13 = vld [vmem:[%s1424_s1 + $0x4c] ss:$12 sps:$4 sm:$0xff]   ;;  %v944_v14 = vld [vmem:[%s1424_s1 + $0x50] ss:$12 sps:$4 sm:$0xff]   ;;  %v945_v15 = vld [vmem:[%s1424_s1 + $0x48] ss:$12 sps:$4 sm:$0xff]  }
   0x6   :  { %335 = vmatpush1.bf16.msra.mxu1 %v932_v5  ;;  %v946_v16 = vld [vmem:[%s1424_s1 + $0x34] ss:$12 sps:$4 sm:$0xff]   ;;  %v948_v17 = vld [vmem:[%s1424_s1 + $0x38] ss:$12 sps:$4 sm:$0xff]   ;;  %v949_v18 = vld [vmem:[%s1424_s1 + $0x30] ss:$12 sps:$4 sm:$0xff]  }
   0x7   :  { %292 = vmatpush1.bf16.msra.mxu0 %v933_v6  ;;  %336 = vmatprep.subr.bf16.mxu1 %v1080_v1  ;;  %v950_v19 = vld [vmem:[%s1424_s1 + $0x1c] ss:$12 sps:$4 sm:$0xff]   ;;  %v952_v20 = vld [vmem:[%s1424_s1 + $0x20] ss:$12 sps:$4 sm:$0xff]   ;;  %v953_v21 = vld [vmem:[%s1424_s1 + $0x18] ss:$12 sps:$4 sm:$0xff]  }
   0x8   :  { %293 = vmatprep.subr.bf16.mxu0 %v934_v7  ;;  %v954_v22 = vld [vmem:[%s1424_s1 + $0x4] ss:$12 sps:$4 sm:$0xff]   ;;  %v956_v23 = vld [vmem:[%s1424_s1 + $0x8] ss:$12 sps:$4 sm:$0xff]   ;;  %v957_v24 = vld [vmem:[%s1424_s1] ss:$12 sps:$4 sm:$0xff]  }
   0x9   :  { %v23_v25 = vld [vmem:[%s1423_s0 + $0x8] sm:$0xff]  ;;  %v25_v26 = vld [vmem:[%s1423_s0 + $0x18] sm:$0xff]  ;;  %v962_v31 = vld [vmem:[%s1424_s1 + $0xf4] ss:$12 sps:$4 sm:$0xff]  }
   0xa   :  { %337 = vmatpush1.bf16.msra.mxu1 %v936_v8  ;;  %v958_v27 = vld [vmem:[%s1424_s1 + $0x10c] ss:$12 sps:$4 sm:$0xff]   ;;  %v27_v28 = vpack.c.bf16 %v25_v26, %v23_v25  ;;  %v960_v29 = vld [vmem:[%s1424_s1 + $0x110] ss:$12 sps:$4 sm:$0xff]   ;;  %v961_v30 = vld [vmem:[%s1424_s1 + $0x108] ss:$12 sps:$4 sm:$0xff]  }
   0xb   :  { %294 = vmatpush1.bf16.msra.mxu0 %v937_v9  ;;  %338 = vmatprep.subr.bf16.mxu1 %v1080_v1  ;;  %v964_v32 = vld [vmem:[%s1424_s1 + $0xf8] ss:$12 sps:$4 sm:$0xff]   ;;  %v965_v33 = vld [vmem:[%s1424_s1 + $0xf0] ss:$12 sps:$4 sm:$0xff]   ;;  %v968_v35 = vld [vmem:[%s1424_s1 + $0xe0] ss:$12 sps:$4 sm:$0xff]  }
   0xc   :  { %295 = vmatprep.subr.bf16.mxu0 %v938_v10  ;;  %873 = vmatprep.mubr.msk.bf16.mxu1 %vm285_vm0, %v27_v28  ;;  %v966_v34 = vld [vmem:[%s1424_s1 + $0xdc] ss:$12 sps:$4 sm:$0xff]   ;;  %v969_v36 = vld [vmem:[%s1424_s1 + $0xd8] ss:$12 sps:$4 sm:$0xff]   ;;  %v24_v40 = vld [vmem:[%s1423_s0 + $0x10] sm:$0xff] }
   0xd   :  { %872 = vmatprep.mubr.msk.bf16.mxu0 %vm285_vm0, %v27_v28  ;;  %v970_v37 = vld [vmem:[%s1424_s1 + $0xc4] ss:$12 sps:$4 sm:$0xff]   ;;  %v972_v38 = vld [vmem:[%s1424_s1 + $0xc8] ss:$12 sps:$4 sm:$0xff]   ;;  %v973_v41 = vld [vmem:[%s1424_s1 + $0xc0] ss:$12 sps:$4 sm:$0xff]  }
   0xe   :  { %339 = vmatpush1.bf16.msra.mxu1 %v940_v11  ;;  %v22_v39 = vld [vmem:[%s1423_s0] sm:$0xff]  ;;  %v976_v42 = vld [vmem:[%s1426_s3 + $0x74] ss:$8 sps:$4 sm:$0xff]   ;;  %v974_v44 = vld [vmem:[%s1426_s3 + $0x70] ss:$8 sps:$4 sm:$0xff]  }
   0xf   :  { %296 = vmatpush1.bf16.msra.mxu0 %v941_v12  ;;  %340 = vmatprep.subr.bf16.mxu1 %v1080_v1  ;;  %v26_v43 = vpack.c.bf16 %v24_v40, %v22_v39  ;;  %v979_v45 = vld [vmem:[%s1426_s3 + $0x64] ss:$8 sps:$4 sm:$0xff]  }
  0x10   :  { %297 = vmatprep.subr.bf16.mxu0 %v942_v13 }
  0x12   :  { %341 = vmatpush1.bf16.msra.mxu1 %v944_v14 }
  0x13   :  { %298 = vmatpush1.bf16.msra.mxu0 %v945_v15  ;;  %342 = vmatprep.subr.bf16.mxu1 %v1080_v1 }
  0x14   :  { %299 = vmatprep.subr.bf16.mxu0 %v946_v16 }
  0x16   :  { %343 = vmatpush1.bf16.msra.mxu1 %v948_v17 }
  0x17   :  { %300 = vmatpush1.bf16.msra.mxu0 %v949_v18  ;;  %344 = vmatprep.subr.bf16.mxu1 %v1080_v1 }
  0x18   :  { %301 = vmatprep.subr.bf16.mxu0 %v950_v19 }
  0x1a   :  { %345 = vmatpush1.bf16.msra.mxu1 %v952_v20 }
  0x1b   :  { %302 = vmatpush1.bf16.msra.mxu0 %v953_v21  ;;  %346 = vmatprep.subr.bf16.mxu1 %v1080_v1 }
  0x1c   :  { %303 = vmatprep.subr.bf16.mxu0 %v954_v22 }
  0x1e   :  { %347 = vmatpush1.bf16.msra.mxu1 %v956_v23 }
  0x1f   :  { %304 = vmatpush1.bf16.msra.mxu0 %v957_v24  ;;  %356 = vmatprep.subr.bf16.mxu1 %v1080_v1 }
  0x20   :  { %313 = vmatprep.subr.bf16.mxu0 %v958_v27 }
  0x22   :  { %357 = vmatpush2.bf16.msra.mxu1 %v960_v29 }
  0x23   :  { %314 = vmatpush2.bf16.msra.mxu0 %v961_v30  ;;  %358 = vmatprep.subr.bf16.mxu1 %v1080_v1 }
  0x24   :  { %315 = vmatprep.subr.bf16.mxu0 %v962_v31 }
  0x26   :  { %359 = vmatpush2.bf16.msra.mxu1 %v964_v32 }
  0x27   :  { %316 = vmatpush2.bf16.msra.mxu0 %v965_v33  ;;  %360 = vmatprep.subr.bf16.mxu1 %v1080_v1 }
  0x28   :  { %317 = vmatprep.subr.bf16.mxu0 %v966_v34 }
  0x2a   :  { %361 = vmatpush2.bf16.msra.mxu1 %v968_v35 }
  0x2b   :  { %318 = vmatpush2.bf16.msra.mxu0 %v969_v36  ;;  %362 = vmatprep.subr.bf16.mxu1 %v1080_v1 }
  0x2c   :  { %319 = vmatprep.subr.bf16.mxu0 %v970_v37 }
  0x2e   :  { %363 = vmatpush2.bf16.msra.mxu1 %v972_v38 }
  0x2f   :  { %320 = vmatpush2.bf16.msra.mxu0 %v973_v41 }
  0x30   :  { %730 = vmatprep.subr.bf16.mxu0 %v976_v42 }
  0x31   :  { %365 = vmatmul.mubr.bf16.vlgmr.msra.gmra.mxu1 %v26_v43 }
  0x32   :  { %10 = vsyncpa [#allocation3], 0  ;;  %322 = vmatmul.mubr.bf16.vlgmr.msra.gmra.mxu0 %v26_v43  ;;  %805 = vmatprep.mubr.bf16.mxu1 %v1080_v1  ;;  %v977_v46 = vld [vmem:[%s1426_s3 + $0x60] ss:$8 sps:$4 sm:$0xff]   ;;  %v982_v47 = vld [vmem:[%s1426_s3 + $0x54] ss:$8 sps:$4 sm:$0xff]   ;;  %v78_v27 = vlaneseq }
  0x33   :  { %731 = vmatpush1.bf16.msra.mxu0 %v974_v44  ;;  %v980_v48 = vld [vmem:[%s1426_s3 + $0x50] ss:$8 sps:$4 sm:$0xff]   ;;  %v985_v49 = vld [vmem:[%s1426_s3 + $0x44] ss:$8 sps:$4 sm:$0xff]   ;;  %v983_v50 = vld [vmem:[%s1426_s3 + $0x40] ss:$8 sps:$4 sm:$0xff]  }
  0x34   :  { %732 = vmatprep.subr.bf16.mxu0 %v979_v45  ;;  %v988_v51 = vld [vmem:[%s1426_s3 + $0x34] ss:$8 sps:$4 sm:$0xff]   ;;  %v986_v52 = vld [vmem:[%s1426_s3 + $0x30] ss:$8 sps:$4 sm:$0xff]   ;;  %v991_v53 = vld [vmem:[%s1426_s3 + $0x24] ss:$8 sps:$4 sm:$0xff]  }
  0x35   :  { %v989_v54 = vld [vmem:[%s1426_s3 + $0x20] ss:$8 sps:$4 sm:$0xff]   ;;  %v994_v55 = vld [vmem:[%s1426_s3 + $0x14] ss:$8 sps:$4 sm:$0xff]   ;;  %v992_v56 = vld [vmem:[%s1426_s3 + $0x10] ss:$8 sps:$4 sm:$0xff]  }
  0x36   :  { %v997_v57 = vld [vmem:[%s1426_s3 + $0x4] ss:$8 sps:$4 sm:$0xff]   ;;  %v1000_v58 = vld [vmem:[%s1426_s3 + $0x174] ss:$8 sps:$4 sm:$0xff]   ;;  %v995_v59 = vld [vmem:[%s1426_s3] ss:$8 sps:$4 sm:$0xff]  }
  0x37   :  { %733 = vmatpush1.bf16.msra.mxu0 %v977_v46  ;;  %v998_v60 = vld [vmem:[%s1426_s3 + $0x170] ss:$8 sps:$4 sm:$0xff]   ;;  %773 = vmatprep.subr.bf16.mxu1 %v1000_v58  ;;  %v1003_v61 = vld [vmem:[%s1426_s3 + $0xf4] ss:$8 sps:$4 sm:$0xff]   ;;  %v1006_v62 = vld [vmem:[%s1426_s3 + $0x164] ss:$8 sps:$4 sm:$0xff]  }
  0x38   :  { %734 = vmatprep.subr.bf16.mxu0 %v982_v47  ;;  %774 = vmatpush1.bf16.msra.mxu1 %v998_v60  ;;  %v1001_v63 = vld [vmem:[%s1426_s3 + $0xf0] ss:$8 sps:$4 sm:$0xff]   ;;  %v1004_v0 = vld [vmem:[%s1426_s3 + $0x160] ss:$8 sps:$4 sm:$0xff]   ;;  %v1009_v1 = vld [vmem:[%s1426_s3 + $0xe4] ss:$8 sps:$4 sm:$0xff]  }
  0x39   :  { %775 = vmatprep.subr.bf16.mxu1 %v1006_v62  ;;  %v1012_v2 = vld [vmem:[%s1426_s3 + $0x154] ss:$8 sps:$4 sm:$0xff]   ;;  %v1007_v3 = vld [vmem:[%s1426_s3 + $0xe0] ss:$8 sps:$4 sm:$0xff]   ;;  %v1010_v4 = vld [vmem:[%s1426_s3 + $0x150] ss:$8 sps:$4 sm:$0xff]  }
  0x3a   :  { %v1015_v5 = vld [vmem:[%s1426_s3 + $0xd4] ss:$8 sps:$4 sm:$0xff]   ;;  %v1018_v6 = vld [vmem:[%s1426_s3 + $0x144] ss:$8 sps:$4 sm:$0xff]   ;;  %v1013_v7 = vld [vmem:[%s1426_s3 + $0xd0] ss:$8 sps:$4 sm:$0xff]  }
  0x3b   :  { %735 = vmatpush1.bf16.msra.mxu0 %v980_v48  ;;  %v1016_v8 = vld [vmem:[%s1426_s3 + $0x140] ss:$8 sps:$4 sm:$0xff]   ;;  %v1021_v9 = vld [vmem:[%s1426_s3 + $0xc4] ss:$8 sps:$4 sm:$0xff]   ;;  %v1024_v10 = vld [vmem:[%s1426_s3 + $0x134] ss:$8 sps:$4 sm:$0xff]  }
  0x3c   :  { %736 = vmatprep.subr.bf16.mxu0 %v985_v49  ;;  %776 = vmatpush1.bf16.msra.mxu1 %v1004_v0  ;;  %v1019_v11 = vld [vmem:[%s1426_s3 + $0xc0] ss:$8 sps:$4 sm:$0xff]   ;;  %v1022_v12 = vld [vmem:[%s1426_s3 + $0x130] ss:$8 sps:$4 sm:$0xff]   ;;  %v1027_v13 = vld [vmem:[%s1426_s3 + $0xb4] ss:$8 sps:$4 sm:$0xff]  }
  0x3d   :  { %777 = vmatprep.subr.bf16.mxu1 %v1012_v2  ;;  %v1030_v14 = vld [vmem:[%s1426_s3 + $0x124] ss:$8 sps:$4 sm:$0xff]   ;;  %v1025_v15 = vld [vmem:[%s1426_s3 + $0xb0] ss:$8 sps:$4 sm:$0xff]   ;;  %v1028_v16 = vld [vmem:[%s1426_s3 + $0x120] ss:$8 sps:$4 sm:$0xff]  }
  0x3e   :  { %v1033_v17 = vld [vmem:[%s1426_s3 + $0xa4] ss:$8 sps:$4 sm:$0xff]   ;;  %v1036_v18 = vld [vmem:[%s1426_s3 + $0x114] ss:$8 sps:$4 sm:$0xff]   ;;  %v1031_v19 = vld [vmem:[%s1426_s3 + $0xa0] ss:$8 sps:$4 sm:$0xff]  }
  0x3f   :  { %737 = vmatpush1.bf16.msra.mxu0 %v983_v50  ;;  %v1034_v20 = vld [vmem:[%s1426_s3 + $0x110] ss:$8 sps:$4 sm:$0xff]   ;;  %v1039_v21 = vld [vmem:[%s1426_s3 + $0x94] ss:$8 sps:$4 sm:$0xff]   ;;  %v1042_v22 = vld [vmem:[%s1426_s3 + $0x104] ss:$8 sps:$4 sm:$0xff]  }
  0x40   :  { %738 = vmatprep.subr.bf16.mxu0 %v988_v51  ;;  %778 = vmatpush1.bf16.msra.mxu1 %v1010_v4  ;;  %v1037_v23 = vld [vmem:[%s1426_s3 + $0x90] ss:$8 sps:$4 sm:$0xff]   ;;  %v1040_v24 = vld [vmem:[%s1426_s3 + $0x100] ss:$8 sps:$4 sm:$0xff]   ;;  %v1045_v26 = vld [vmem:[%s1426_s3 + $0x84] ss:$8 sps:$4 sm:$0xff]  }
  0x41   :  { %779 = vmatprep.subr.bf16.mxu1 %v1018_v6  ;;  %v1043_v25 = vld [vmem:[%s1426_s3 + $0x80] ss:$8 sps:$4 sm:$0xff]   ;;  %v1393_v28 = vshrl.u32 %v78_v27, 7 }
  0x42   :  { %v76_v30 = vld [vmem:[%s1425_s2] sm:$0x7] }
  0x43   :  { %739 = vmatpush1.bf16.msra.mxu0 %v986_v52  ;;  %v88_v29 = vsub.s32 2, %v1393_v28  ;;  %v80_v31 = vsub.s32 0, %v1393_v28  ;;  %v84_v32 = vsub.s32 1, %v1393_v28 }
  0x44   :  { %740 = vmatprep.subr.bf16.mxu0 %v991_v53  ;;  %780 = vmatpush1.bf16.msra.mxu1 %v1016_v8 }
  0x45   :  { %781 = vmatprep.subr.bf16.mxu1 %v1024_v10  ;;  %v89_v33 = vrot.slane %v76_v30, %v88_v29  ;;  %v81_v34 = vrot.slane %v76_v30, %v80_v31  ;;  %v85_v36 = vrot.slane %v76_v30, %v84_v32 }
  0x47   :  { %741 = vmatpush1.bf16.msra.mxu0 %v989_v54 }
  0x48   :  { %742 = vmatprep.subr.bf16.mxu0 %v994_v55  ;;  %782 = vmatpush1.bf16.msra.mxu1 %v1022_v12 }
  0x49   :  { %783 = vmatprep.subr.bf16.mxu1 %v1030_v14 }
  0x4b   :  { %743 = vmatpush1.bf16.msra.mxu0 %v992_v56 }
  0x4c   :  { %744 = vmatprep.subr.bf16.mxu0 %v997_v57  ;;  %784 = vmatpush1.bf16.msra.mxu1 %v1028_v16 }
  0x4d   :  { %785 = vmatprep.subr.bf16.mxu1 %v1036_v18 }
  0x4f   :  { %745 = vmatpush1.bf16.msra.mxu0 %v995_v59 }
  0x50   :  { %746 = vmatprep.subr.bf16.mxu0 %v1003_v61  ;;  %786 = vmatpush1.bf16.msra.mxu1 %v1034_v20 }
  0x51   :  { %787 = vmatprep.subr.bf16.mxu1 %v1042_v22 }
  0x53   :  { %747 = vmatpush2.bf16.msra.mxu0 %v1001_v63 }
  0x54   :  { %748 = vmatprep.subr.bf16.mxu0 %v1009_v1  ;;  %788 = vmatpush1.bf16.msra.mxu1 %v1040_v24 }
  0x57   :  { %749 = vmatpush2.bf16.msra.mxu0 %v1007_v3 }
  0x58   :  { %750 = vmatprep.subr.bf16.mxu0 %v1015_v5 }
  0x5b   :  { %751 = vmatpush2.bf16.msra.mxu0 %v1013_v7 }
  0x5c   :  { %752 = vmatprep.subr.bf16.mxu0 %v1021_v9 }
  0x5f   :  { %753 = vmatpush2.bf16.msra.mxu0 %v1019_v11 }
  0x60   :  { %754 = vmatprep.subr.bf16.mxu0 %v1027_v13 }
  0x63   :  { %755 = vmatpush2.bf16.msra.mxu0 %v1025_v15 }
  0x64   :  { %756 = vmatprep.subr.bf16.mxu0 %v1033_v17 }
  0x67   :  { %757 = vmatpush2.bf16.msra.mxu0 %v1031_v19 }
  0x68   :  { %758 = vmatprep.subr.bf16.mxu0 %v1039_v21 }
  0x6b   :  { %759 = vmatpush2.bf16.msra.mxu0 %v1037_v23 }
  0x6c   :  { %760 = vmatprep.subr.bf16.mxu0 %v1045_v26 }
  0x6f   :  { %761 = vmatpush2.bf16.msra.mxu0 %v1043_v25 }
  0xf1   :  { %v366_v35 = vpop.f32.mrf.mxu1 }
  0xf2   :  { %v367_v37 = vadd.f32 %v366_v35, %v89_v33  ;;  %v323_v38 = vpop.f32.mrf.mxu0 }
  0xf3   :  { %v1405_v39 = vadd.f32 %v323_v38, %v81_v34  ;;  %v368_v40 = vpop.f32.mrf.mxu1 }
  0xf4   :  { %v387_v41 = vmul.f32 %v367_v37, %v367_v37  ;;  %v325_v42 = vpop.f32.mrf.mxu0  ;;  %v381_v46 = vmul.f32 0.7978846, %v367_v37  ;;  %v375_v20 = vmul.f32 0.5, %v367_v37 }
  0xf5   :  { %v385_v43 = vmul.f32 %v1405_v39, %v1405_v39  ;;  %v326_v44 = vadd.f32 %v325_v42, %v85_v36  ;;  %v369_v45 = vpop.f32.mrf.mxu1  ;;  %v379_v62 = vmul.f32 0.7978846, %v1405_v39 }
  0xf6   :  { %v393_v47 = vmul.f32 0.044715, %v387_v41  ;;  %v370_v48 = vadd.f32 %v369_v45, %v89_v33  ;;  %v327_v49 = vpop.f32.mrf.mxu0  ;;  %v373_v41 = vmul.f32 0.5, %v1405_v39 }
  0xf7   :  { %v391_v50 = vmul.f32 0.044715, %v385_v43  ;;  %v386_v51 = vmul.f32 %v326_v44, %v326_v44  ;;  %v371_v52 = vpop.f32.mrf.mxu1  ;;  %v328_v57 = vadd.f32 %v327_v49, %v81_v34  ;;  %v380_v63 = vmul.f32 0.7978846, %v326_v44 }
  0xf8   :  { %v399_v53 = vadd.f32 1.0, %v393_v47  ;;  %v390_v54 = vmul.f32 %v370_v48, %v370_v48  ;;  %v329_v55 = vpop.f32.mrf.mxu0  ;;  %v384_v1 = vmul.f32 0.7978846, %v370_v48  ;;  %v378_v21 = vmul.f32 0.5, %v370_v48  ;;  %v478_v48 = vld [vmem:[%s1427_s4] sm:$0x3] }
  0xf9   :  { %v392_v56 = vmul.f32 0.044715, %v386_v51  ;;  %v330_v58 = vadd.f32 %v329_v55, %v85_v36  ;;  %v397_v60 = vadd.f32 1.0, %v391_v50  ;;  %v388_v3 = vmul.f32 %v328_v57, %v328_v57  ;;  %s1081_s4 = smov [#allocation2]  }
  0xfa   :  { %v405_v59 = vmul.f32 %v399_v53, %v381_v46  ;;  %v396_v61 = vmul.f32 0.044715, %v390_v54  ;;  %v382_v10 = vmul.f32 0.7978846, %v328_v57  ;;  %v376_v33 = vmul.f32 0.5, %v328_v57  ;;  %s825_s13 = sshll.u32 %s1081_s4, 4  ;;  %s826_s13 = int_to_ptr.vmem [resolvable:$true] %s825_s13 }
  0xfb   :  { %v398_v0 = vadd.f32 1.0, %v392_v56  ;;  %v389_v5 = vmul.f32 %v330_v58, %v330_v58  ;;  %v403_v6 = vmul.f32 %v397_v60, %v379_v62  ;;  %v394_v8 = vmul.f32 0.044715, %v388_v3  ;;  %s1058_s14 = scalar_lea.vmem %s826_s13, 512  ;;  %p1063_p1 = scmp.lt.s32.totalorder %s826_s13, %s826_s13 }
  0xfc   :  { %1046 = vtanh.f32 %v405_v59  ;;  %v402_v2 = vadd.f32 1.0, %v396_v61  ;;  %v383_v12 = vmul.f32 0.7978846, %v330_v58  ;;  %v374_v36 = vmul.f32 0.5, %v326_v44  ;;  %p1059_p0 = scmp.ne.s32.totalorder %s826_s13, %s1058_s14  ;;  %p1064_p2 = scmp.lt.s32.totalorder %s1058_s14, %s1058_s14 }
  0xfd   :  { %v404_v4 = vmul.f32 %v398_v0, %v380_v63  ;;  %v395_v9 = vmul.f32 0.044715, %v389_v5  ;;  %v400_v11 = vadd.f32 1.0, %v394_v8  ;;  %v377_v38 = vmul.f32 0.5, %v330_v58 }
  0xfe   :  { %v408_v7 = vmul.f32 %v402_v2, %v384_v1  ;;  %v483_v44 = vrot.slane %v478_v48, %v80_v31  ;;  %v487_v39 = vrot.slane %v478_v48, %v84_v32  ;;  %p1065_p3 = por %p1064_p2, %p1063_p1 }
  0xff   :  { %v401_v13 = vadd.f32 1.0, %v395_v9  ;;  %v406_v14 = vmul.f32 %v400_v11, %v382_v10 }
 0x100   :  { %1048 = vtanh.f32 %v408_v7  ;;  %p1066_p4 = pnand %p1065_p3, %p1059_p0 }
 0x101   :  { %1050 = vtanh.f32 %v404_v4  ;;  %v407_v15 = vmul.f32 %v401_v13, %v383_v12 }
 0x102   :  { %1052 = vtanh.f32 %v403_v6 }
 0x103   :  { %1054 = vtanh.f32 %v406_v14 }
 0x104   :  { %1056 = vtanh.f32 %v407_v15 }
 0x109   :  { %v1047_v16 = vpop.eup %1046 }
 0x10a   :  { %v417_v17 = vadd.f32 1.0, %v1047_v16 }
 0x10c   :  { %v423_v24 = vmul.f32 %v417_v17, %v375_v20 }
 0x10d   :  { %v1049_v18 = vpop.eup %1048 }
 0x10e   :  { %v1051_v19 = vpop.eup %1050  ;;  %v420_v22 = vadd.f32 1.0, %v1049_v18 }
 0x10f   :  { %v1053_v23 = vpop.eup %1052  ;;  %v416_v27 = vadd.f32 1.0, %v1051_v19 }
 0x110   :  { %v426_v25 = vmul.f32 %v420_v22, %v378_v21  ;;  %v1055_v26 = vpop.eup %1054  ;;  %v415_v30 = vadd.f32 1.0, %v1053_v23 }
 0x111   :  { %v1057_v29 = vpop.eup %1056  ;;  %v418_v34 = vadd.f32 1.0, %v1055_v26  ;;  %v422_v37 = vmul.f32 %v416_v27, %v374_v36 }
 0x112   :  { %v429_v35 = vpack.c.bf16 %v426_v25, %v423_v24  ;;  %v419_v40 = vadd.f32 1.0, %v1057_v29  ;;  %v421_v45 = vmul.f32 %v415_v30, %v373_v41 }
 0x113   :  { %v424_v42 = vmul.f32 %v418_v34, %v376_v33 }
 0x114   :  { %806 = vmatmul.mubr.bf16.vlgmr.msra.gmra.mxu1 %v429_v35  ;;  %v425_v43 = vmul.f32 %v419_v40, %v377_v38 }
 0x115   :  { %v427_v47 = vpack.c.bf16 %v424_v42, %v421_v45 }
 0x116   :  { %v428_v46 = vpack.c.bf16 %v425_v43, %v422_v37 }
 0x118   :  { %762 = vmatprep.mubr.bf16.mxu0 %v428_v46 }
 0x119   :  { %763 = vmatmul.mubr.bf16.vlgmr.msra.gmra.mxu0 %v427_v47 }
 0x1d4   :  { %v807_v49 = vpop.f32.mrf.mxu1 }
 0x1d6   :  { %v809_v50 = vpop.f32.mrf.mxu1 }
 0x1d8   :  { %v811_v56 = vpop.f32.mrf.mxu1 }
 0x1d9   :  { %v764_v51 = vpop.f32.mrf.mxu0 }
 0x1da   :  { %v765_v52 = vadd.f32 %v764_v51, %v483_v44  ;;  %v813_v28 = vpop.f32.mrf.mxu1 }
 0x1db   :  { %v766_v53 = vpop.f32.mrf.mxu0 }
 0x1dc   :  { %v808_v54 = vadd.f32 %v807_v49, %v765_v52  ;;  %v767_v55 = vadd.f32 %v766_v53, %v487_v39 }
 0x1dd   :  { %v768_v57 = vpop.f32.mrf.mxu0 }
 0x1de   :  { %816 = vst [vmem:[#allocation2] sm:$0xff] %v808_v54  ;;  %v810_v58 = vadd.f32 %v809_v50, %v767_v55  ;;  %v769_v59 = vadd.f32 %v768_v57, %v483_v44 }
 0x1df   :  { %v770_v60 = vpop.f32.mrf.mxu0 }
 0x1e0   :  { %817 = vst.msk [vmem:[#allocation2 + $0x8] sm:$0xff] %vm285_vm0, %v810_v58  ;;  %v812_v31 = vadd.f32 %v811_v56, %v769_v59  ;;  %v771_v61 = vadd.f32 %v770_v60, %v487_v39 }
 0x1e2   :  { %818 = vst [vmem:[#allocation2 + $0x10] sm:$0xff] %v812_v31  ;;  %v814_v32 = vadd.f32 %v813_v28, %v771_v61 }
 0x1e4   :  { %819 = vst.msk [vmem:[#allocation2 + $0x18] sm:$0xff] %vm285_vm0, %v814_v32 }
 0x1e5   :  { %1069 = shalt.err (!%p1066_p4)
}
 0x1e6   :  { %s1082_s15 = smov 256   ;;  %s1083_s16 = smov 16  }
 0x1e7   :  { %831 = dma.vmem_to_hbm [thread:$0]  %s826_s13, 512, %s1428_s5, [#allocation3], %s1082_s15, %s1082_s15, %s1083_s16  }
 0x1e8   :  { %1078 = dma.done.wait [#allocation3], 512  }
 0x1e9   :  { %1079 = vsyncadd [#allocation3], 4294966784 }
 0x1ea   :  { %835 = vsyncpa [#allocation3], 1 }

</bundles_post_ra>
